<compile_context>
chip_gen: v6e
topology: v6e:2x2x1
jax: 0.10.0
libtpu: 0.0.40
codegen_flags: <defaults>
</compile_context>

<pallas_src>
import functools
import math

import jax
import jax.numpy as jnp
from jax.experimental import pallas as pl
from jax.experimental.pallas import tpu as pltpu


def _mix32(a):
    """splitmix32-style finalizer on uint32 (VPU-only ops: xor/shift/mul)."""
    a = a ^ (a >> jnp.uint32(16))
    a = a * jnp.uint32(0x7FEB352D)
    a = a ^ (a >> jnp.uint32(15))
    a = a * jnp.uint32(0x846CA68B)
    a = a ^ (a >> jnp.uint32(16))
    return a


def _lower_snr_kernel(seed_ref, x_ref, o_ref, *, p, block_rows, total_cols):
    # TODO(synk): LowerSnr.forward in the reference is unimplemented (`pass`);
    # this kernel realizes the implied SNR-lowering noise-injection transform.
    x = x_ref[...]
    xf = x.astype(jnp.float32)  # no-op for f32 inputs
    shape = xf.shape

    # Per-(sample, channel) statistics, single pass over the tile.
    # (Correct because the full H*W of each row sits in this block.)
    inv_n = jnp.float32(1.0 / total_cols)
    s1 = jnp.sum(xf, axis=-1, keepdims=True)
    s2 = jnp.sum(xf * xf, axis=-1, keepdims=True)
    mean = s1 * inv_n
    var = jnp.maximum(s2 * inv_n - mean * mean, jnp.float32(0.0))
    std = jnp.sqrt(var)

    # Counter-based stateless PRNG: unique 32-bit counter per *global* element,
    # mixed with the user seed.  Deterministic, tiling-invariant, and lowers on
    # both real TPU (Mosaic) and the interpret-mode emulator.
    i = pl.program_id(0)
    row = (jax.lax.broadcasted_iota(jnp.uint32, shape, 0)
           + (i * block_rows).astype(jnp.uint32))
    col = jax.lax.broadcasted_iota(jnp.uint32, shape, 1)
    ctr = row * jnp.uint32(total_cols) + col
    seed = seed_ref[0].astype(jnp.uint32)

    # 4 independent uniforms -> Irwin-Hall(4) approx standard normal
    # (mean 2, var 1/3), rescaled to unit variance.  Cheap: no EUP exp/log.
    acc = jnp.zeros(shape, jnp.float32)
    for salt in (0x9E3779B9, 0x85EBCA6B, 0xC2B2AE35, 0x27D4EB2F):
        h = _mix32(ctr ^ (seed + jnp.uint32(salt)))
        # Take the top 24 bits -> value fits in positive int32 range -> f32.
        u = ((h >> jnp.uint32(8)).astype(jnp.int32).astype(jnp.float32)
             * jnp.float32(1.0 / (1 << 24)))
        acc = acc + u
    noise = (acc - jnp.float32(2.0)) * jnp.float32(math.sqrt(3.0))

    o_ref[...] = (xf + jnp.float32(p) * std * noise).astype(o_ref.dtype)


def lower_snr(x, seed, p=0.5):
    """x: (N, C, H, W) float array, seed: (1,) int32 array."""
    n, c, h, w = x.shape
    rows, cols = n * c, h * w
    x2 = x.reshape(rows, cols)

    # Pick a row-tile size: multiple of 8, ~<=2 MiB per tile (fits the default
    # scoped VMEM even on v5e with 2x double-buffering + f32 temporaries).
    itemsize = jnp.dtype(x.dtype).itemsize
    target_tile_bytes = 2 * 1024 * 1024
    tr_cap = max(8, (target_tile_bytes // (cols * max(itemsize, 4))) // 8 * 8)
    tr = min(rows, tr_cap)  # either a multiple of 8 or the full row extent
    num_blocks = pl.cdiv(rows, tr)
    # TODO(synk): for very large H*W (single row tile > a few MiB) a two-pass /
    # lane-tiled accumulator design would be needed; full-row blocks assumed.

    kernel = functools.partial(
        _lower_snr_kernel, p=p, block_rows=tr, total_cols=cols)

    cost = pl.CostEstimate(
        flops=42 * rows * cols,           # hash + stats + noise combine
        transcendentals=rows,             # one sqrt per (N, C) row
        bytes_accessed=2 * rows * cols * itemsize,
    )

    out = pl.pallas_call(
        kernel,
        out_shape=jax.ShapeDtypeStruct((rows, cols), x.dtype),
        grid_spec=pltpu.PrefetchScalarGridSpec(
            num_scalar_prefetch=1,                       # seed -> SMEM
            grid=(num_blocks,),
            in_specs=[pl.BlockSpec((tr, cols), lambda i, seed_ref: (i, 0))],
            out_specs=pl.BlockSpec((tr, cols), lambda i, seed_ref: (i, 0)),
        ),
        compiler_params=pltpu.CompilerParams(
            dimension_semantics=("parallel",)),          # megacore on v7x
        cost_estimate=cost,
    )(seed, x2)

    return out.reshape(n, c, h, w)


if __name__ == "__main__":
    key = jax.random.PRNGKey(0)
    # Small NCHW input consistent with an image-transform module.
    x = jax.random.normal(key, (2, 4, 16, 16), dtype=jnp.float32)
    seed = jnp.array([42], dtype=jnp.int32)

    y = lower_snr(x, seed, p=0.5)
    jax.block_until_ready(y)

    assert y.shape == x.shape, (y.shape, x.shape)
    assert y.dtype == x.dtype, (y.dtype, x.dtype)
    assert bool(jnp.all(jnp.isfinite(y)))
    assert not bool(jnp.allclose(y, x))  # noise was actually injected

    print("KERNEL_OK")
</pallas_src>

<mosaic_0001>
module attributes {stable_mosaic.version = 11 : i64} {
  func.func @_lower_snr_kernel(%arg0: i32, %arg1: memref<1xi32, #tpu.memory_space<smem>>, %arg2: memref<8x256xf32, #tpu.memory_space<vmem>>, %arg3: memref<8x256xf32, #tpu.memory_space<vmem>>) attributes {dimension_semantics = [#tpu.dimension_semantics<parallel>], iteration_bounds = array<i64: 1>, scalar_prefetch = 1 : i64, scratch_operands = 0 : i64, tpu.core_type = #tpu.core_type<tc>, window_params = [{transform_indices = @transform_0, window_bounds = array<i64: 8, 256>}, {transform_indices = @transform_1, window_bounds = array<i64: 8, 256>}]} {
    %c0 = arith.constant 0 : index
    %c0_0 = arith.constant 0 : index
    %0 = vector.load %arg2[%c0, %c0_0] : memref<8x256xf32, #tpu.memory_space<vmem>>, vector<8x256xf32>
    %cst = arith.constant dense<0.000000e+00> : vector<8xf32>
    %1 = vector.multi_reduction <add>, %0, %cst [1] : vector<8x256xf32> to vector<8xf32>
    %2 = vector.shape_cast %1 : vector<8xf32> to vector<8x1xf32>
    %3 = arith.mulf %0, %0 : vector<8x256xf32>
    %cst_1 = arith.constant dense<0.000000e+00> : vector<8xf32>
    %4 = vector.multi_reduction <add>, %3, %cst_1 [1] : vector<8x256xf32> to vector<8xf32>
    %5 = vector.shape_cast %4 : vector<8xf32> to vector<8x1xf32>
    %cst_2 = arith.constant 3.906250e-03 : f32
    %6 = vector.broadcast %cst_2 : f32 to vector<8x1xf32>
    %7 = arith.mulf %2, %6 : vector<8x1xf32>
    %cst_3 = arith.constant 3.906250e-03 : f32
    %8 = vector.broadcast %cst_3 : f32 to vector<8x1xf32>
    %9 = arith.mulf %5, %8 : vector<8x1xf32>
    %10 = arith.mulf %7, %7 : vector<8x1xf32>
    %11 = arith.subf %9, %10 : vector<8x1xf32>
    %cst_4 = arith.constant 0.000000e+00 : f32
    %12 = vector.broadcast %cst_4 : f32 to vector<8x1xf32>
    %13 = arith.maximumf %11, %12 : vector<8x1xf32>
    %14 = math.sqrt %13 : vector<8x1xf32>
    %15 = tpu.iota {dimensions = array<i32: 0>} : vector<8x256xi32>
    %c8_i32 = arith.constant 8 : i32
    %16 = arith.muli %arg0, %c8_i32 : i32
    %17 = vector.broadcast %16 : i32 to vector<8x256xi32>
    %18 = arith.addi %15, %17 : vector<8x256xi32>
    %19 = tpu.iota {dimensions = array<i32: 1>} : vector<8x256xi32>
    %c256_i32 = arith.constant 256 : i32
    %20 = vector.broadcast %c256_i32 : i32 to vector<8x256xi32>
    %21 = arith.muli %18, %20 : vector<8x256xi32>
    %22 = arith.addi %21, %19 : vector<8x256xi32>
    %c0_5 = arith.constant 0 : index
    %23 = memref.load %arg1[%c0_5] : memref<1xi32, #tpu.memory_space<smem>>
    %cst_6 = arith.constant 0.000000e+00 : f32
    %24 = vector.broadcast %cst_6 : f32 to vector<8x256xf32>
    %c-1640531527_i32 = arith.constant -1640531527 : i32
    %25 = arith.addi %23, %c-1640531527_i32 : i32
    %26 = vector.broadcast %25 : i32 to vector<8x256xi32>
    %27 = arith.xori %22, %26 : vector<8x256xi32>
    %c16_i32 = arith.constant 16 : i32
    %28 = vector.broadcast %c16_i32 : i32 to vector<8x256xi32>
    %29 = arith.shrui %27, %28 : vector<8x256xi32>
    %30 = arith.xori %27, %29 : vector<8x256xi32>
    %c2146121005_i32 = arith.constant 2146121005 : i32
    %31 = vector.broadcast %c2146121005_i32 : i32 to vector<8x256xi32>
    %32 = arith.muli %30, %31 : vector<8x256xi32>
    %c15_i32 = arith.constant 15 : i32
    %33 = vector.broadcast %c15_i32 : i32 to vector<8x256xi32>
    %34 = arith.shrui %32, %33 : vector<8x256xi32>
    %35 = arith.xori %32, %34 : vector<8x256xi32>
    %c-2073254261_i32 = arith.constant -2073254261 : i32
    %36 = vector.broadcast %c-2073254261_i32 : i32 to vector<8x256xi32>
    %37 = arith.muli %35, %36 : vector<8x256xi32>
    %c16_i32_7 = arith.constant 16 : i32
    %38 = vector.broadcast %c16_i32_7 : i32 to vector<8x256xi32>
    %39 = arith.shrui %37, %38 : vector<8x256xi32>
    %40 = arith.xori %37, %39 : vector<8x256xi32>
    %c8_i32_8 = arith.constant 8 : i32
    %41 = vector.broadcast %c8_i32_8 : i32 to vector<8x256xi32>
    %42 = arith.shrui %40, %41 : vector<8x256xi32>
    %43 = arith.sitofp %42 : vector<8x256xi32> to vector<8x256xf32>
    %cst_9 = arith.constant 5.96046448E-8 : f32
    %44 = vector.broadcast %cst_9 : f32 to vector<8x256xf32>
    %45 = arith.mulf %43, %44 : vector<8x256xf32>
    %46 = arith.addf %24, %45 : vector<8x256xf32>
    %c-2048144789_i32 = arith.constant -2048144789 : i32
    %47 = arith.addi %23, %c-2048144789_i32 : i32
    %48 = vector.broadcast %47 : i32 to vector<8x256xi32>
    %49 = arith.xori %22, %48 : vector<8x256xi32>
    %c16_i32_10 = arith.constant 16 : i32
    %50 = vector.broadcast %c16_i32_10 : i32 to vector<8x256xi32>
    %51 = arith.shrui %49, %50 : vector<8x256xi32>
    %52 = arith.xori %49, %51 : vector<8x256xi32>
    %c2146121005_i32_11 = arith.constant 2146121005 : i32
    %53 = vector.broadcast %c2146121005_i32_11 : i32 to vector<8x256xi32>
    %54 = arith.muli %52, %53 : vector<8x256xi32>
    %c15_i32_12 = arith.constant 15 : i32
    %55 = vector.broadcast %c15_i32_12 : i32 to vector<8x256xi32>
    %56 = arith.shrui %54, %55 : vector<8x256xi32>
    %57 = arith.xori %54, %56 : vector<8x256xi32>
    %c-2073254261_i32_13 = arith.constant -2073254261 : i32
    %58 = vector.broadcast %c-2073254261_i32_13 : i32 to vector<8x256xi32>
    %59 = arith.muli %57, %58 : vector<8x256xi32>
    %c16_i32_14 = arith.constant 16 : i32
    %60 = vector.broadcast %c16_i32_14 : i32 to vector<8x256xi32>
    %61 = arith.shrui %59, %60 : vector<8x256xi32>
    %62 = arith.xori %59, %61 : vector<8x256xi32>
    %c8_i32_15 = arith.constant 8 : i32
    %63 = vector.broadcast %c8_i32_15 : i32 to vector<8x256xi32>
    %64 = arith.shrui %62, %63 : vector<8x256xi32>
    %65 = arith.sitofp %64 : vector<8x256xi32> to vector<8x256xf32>
    %cst_16 = arith.constant 5.96046448E-8 : f32
    %66 = vector.broadcast %cst_16 : f32 to vector<8x256xf32>
    %67 = arith.mulf %65, %66 : vector<8x256xf32>
    %68 = arith.addf %46, %67 : vector<8x256xf32>
    %c-1028477387_i32 = arith.constant -1028477387 : i32
    %69 = arith.addi %23, %c-1028477387_i32 : i32
    %70 = vector.broadcast %69 : i32 to vector<8x256xi32>
    %71 = arith.xori %22, %70 : vector<8x256xi32>
    %c16_i32_17 = arith.constant 16 : i32
    %72 = vector.broadcast %c16_i32_17 : i32 to vector<8x256xi32>
    %73 = arith.shrui %71, %72 : vector<8x256xi32>
    %74 = arith.xori %71, %73 : vector<8x256xi32>
    %c2146121005_i32_18 = arith.constant 2146121005 : i32
    %75 = vector.broadcast %c2146121005_i32_18 : i32 to vector<8x256xi32>
    %76 = arith.muli %74, %75 : vector<8x256xi32>
    %c15_i32_19 = arith.constant 15 : i32
    %77 = vector.broadcast %c15_i32_19 : i32 to vector<8x256xi32>
    %78 = arith.shrui %76, %77 : vector<8x256xi32>
    %79 = arith.xori %76, %78 : vector<8x256xi32>
    %c-2073254261_i32_20 = arith.constant -2073254261 : i32
    %80 = vector.broadcast %c-2073254261_i32_20 : i32 to vector<8x256xi32>
    %81 = arith.muli %79, %80 : vector<8x256xi32>
    %c16_i32_21 = arith.constant 16 : i32
    %82 = vector.broadcast %c16_i32_21 : i32 to vector<8x256xi32>
    %83 = arith.shrui %81, %82 : vector<8x256xi32>
    %84 = arith.xori %81, %83 : vector<8x256xi32>
    %c8_i32_22 = arith.constant 8 : i32
    %85 = vector.broadcast %c8_i32_22 : i32 to vector<8x256xi32>
    %86 = arith.shrui %84, %85 : vector<8x256xi32>
    %87 = arith.sitofp %86 : vector<8x256xi32> to vector<8x256xf32>
    %cst_23 = arith.constant 5.96046448E-8 : f32
    %88 = vector.broadcast %cst_23 : f32 to vector<8x256xf32>
    %89 = arith.mulf %87, %88 : vector<8x256xf32>
    %90 = arith.addf %68, %89 : vector<8x256xf32>
    %c668265263_i32 = arith.constant 668265263 : i32
    %91 = arith.addi %23, %c668265263_i32 : i32
    %92 = vector.broadcast %91 : i32 to vector<8x256xi32>
    %93 = arith.xori %22, %92 : vector<8x256xi32>
    %c16_i32_24 = arith.constant 16 : i32
    %94 = vector.broadcast %c16_i32_24 : i32 to vector<8x256xi32>
    %95 = arith.shrui %93, %94 : vector<8x256xi32>
    %96 = arith.xori %93, %95 : vector<8x256xi32>
    %c2146121005_i32_25 = arith.constant 2146121005 : i32
    %97 = vector.broadcast %c2146121005_i32_25 : i32 to vector<8x256xi32>
    %98 = arith.muli %96, %97 : vector<8x256xi32>
    %c15_i32_26 = arith.constant 15 : i32
    %99 = vector.broadcast %c15_i32_26 : i32 to vector<8x256xi32>
    %100 = arith.shrui %98, %99 : vector<8x256xi32>
    %101 = arith.xori %98, %100 : vector<8x256xi32>
    %c-2073254261_i32_27 = arith.constant -2073254261 : i32
    %102 = vector.broadcast %c-2073254261_i32_27 : i32 to vector<8x256xi32>
    %103 = arith.muli %101, %102 : vector<8x256xi32>
    %c16_i32_28 = arith.constant 16 : i32
    %104 = vector.broadcast %c16_i32_28 : i32 to vector<8x256xi32>
    %105 = arith.shrui %103, %104 : vector<8x256xi32>
    %106 = arith.xori %103, %105 : vector<8x256xi32>
    %c8_i32_29 = arith.constant 8 : i32
    %107 = vector.broadcast %c8_i32_29 : i32 to vector<8x256xi32>
    %108 = arith.shrui %106, %107 : vector<8x256xi32>
    %109 = arith.sitofp %108 : vector<8x256xi32> to vector<8x256xf32>
    %cst_30 = arith.constant 5.96046448E-8 : f32
    %110 = vector.broadcast %cst_30 : f32 to vector<8x256xf32>
    %111 = arith.mulf %109, %110 : vector<8x256xf32>
    %112 = arith.addf %90, %111 : vector<8x256xf32>
    %cst_31 = arith.constant 2.000000e+00 : f32
    %113 = vector.broadcast %cst_31 : f32 to vector<8x256xf32>
    %114 = arith.subf %112, %113 : vector<8x256xf32>
    %cst_32 = arith.constant 1.73205078 : f32
    %115 = vector.broadcast %cst_32 : f32 to vector<8x256xf32>
    %116 = arith.mulf %114, %115 : vector<8x256xf32>
    %cst_33 = arith.constant 5.000000e-01 : f32
    %117 = vector.broadcast %cst_33 : f32 to vector<8x1xf32>
    %118 = arith.mulf %117, %14 : vector<8x1xf32>
    %119 = vector.broadcast %118 : vector<8x1xf32> to vector<8x256xf32>
    %120 = arith.mulf %119, %116 : vector<8x256xf32>
    %121 = arith.addf %0, %120 : vector<8x256xf32>
    %c0_34 = arith.constant 0 : index
    %c0_35 = arith.constant 0 : index
    %122 = vector.load %arg3[%c0_34, %c0_35] : memref<8x256xf32, #tpu.memory_space<vmem>>, vector<8x256xf32>
    tpu.vector_store %arg3[%c0_34, %c0_35], %121 {strides = array<i32>} : memref<8x256xf32, #tpu.memory_space<vmem>>, vector<8x256xf32>,
    return
  }
  func.func @transform_0(%arg0: i32, %arg1: memref<1xi32, #tpu.memory_space<smem>>) -> (i32, i32) {
    %c0_i32 = arith.constant 0 : i32
    %c0_i32_0 = arith.constant 0 : i32
    return %arg0, %c0_i32 : i32, i32
  }
  func.func @transform_1(%arg0: i32, %arg1: memref<1xi32, #tpu.memory_space<smem>>) -> (i32, i32) {
    %c0_i32 = arith.constant 0 : i32
    %c0_i32_0 = arith.constant 0 : i32
    return %arg0, %c0_i32 : i32, i32
  }
}

</mosaic_0001>

<bundles_post_ra>
// kernel: tpu_custom_call.1
= control target key start
LH: loop header
LB: loop body
LE: loop exit
PB: predicated region body
PF: predicated region fallthrough
CT: control target
= control target key end

     0   :  { %8 = vsyncpa [#allocation5], 0  ;;  %s292_s0 = inlined_call_operand.<no memory space> [shape: s32[1], index: 0, kind: input, shape index: {}]   ;;  %s293_s1 = inlined_call_operand.hbm [shape: f32[8,256], index: 1, kind: input, shape index: {}]   ;;  %s294_s2 = inlined_call_operand.hbm [shape: f32[8,256], index: 2, kind: output, shape index: {}]  }
   0x1   :  { %9 = vsyncpa [#allocation6], 0  ;;  %s245_s9 = smov [#allocation4]  }
   0x2   :  { %s16_s10 = sshll.u32 %s245_s9, 4  ;;  %s17_s10 = int_to_ptr.vmem [resolvable:$true] %s16_s10 }
   0x3   :  { %s209_s11 = scalar_lea.vmem %s17_s10, 256  ;;  %p214_p1 = scmp.lt.s32.totalorder %s17_s10, %s17_s10 }
   0x4   :  { %p210_p0 = scmp.ne.s32.totalorder %s17_s10, %s209_s11  ;;  %p215_p2 = scmp.lt.s32.totalorder %s209_s11, %s209_s11 }
   0x6   :  { %p216_p3 = por %p215_p2, %p214_p1 }
   0x8   :  { %p217_p4 = pnand %p216_p3, %p210_p0 }
   0xa   :  { %220 = shalt.err (!%p217_p4)
}
   0xb   :  { %19 = dma.hbm_to_vmem [thread:$0]  %s293_s1, 256, %s17_s10, [#allocation5]  }
   0xc   :  { %241 = dma.done.wait [#allocation5], 256  }
   0xd   :  { %242 = vsyncadd [#allocation5], 4294967040  ;;  %v265_v0 = vld [vmem:[#allocation4] sm:$0xff]  ;;  %v267_v1 = vld [vmem:[#allocation4 + $0x8] sm:$0xff]  ;;  %v45_v6 = vlaneseq  ;;  %s57_s15 = sadd.s32 2654435769, %s292_s0 }
   0xe   :  { %v25_v2 = vadd.f32 %v267_v1, %v265_v0  ;;  %v28_v3 = vmul.f32 %v265_v0, %v265_v0  ;;  %v29_v4 = vmul.f32 %v267_v1, %v267_v1  ;;  %s85_s18 = sadd.s32 2246822507, %s292_s0  ;;  %v58_v13 = vstv %s57_s15  ;;  %s113_s21 = sadd.s32 3266489909, %s292_s0 }
   0xf   :  { %v46_v7 = vshrl.u32 %v45_v6, 7  ;;  %v51_v8 = vand.u32 127, %v45_v6  ;;  %v86_v14 = vstv %s85_s18  ;;  %v114_v19 = vstv %s113_s21  ;;  %s141_s24 = sadd.s32 668265263, %s292_s0  ;;  %s246_s0 = smov [#allocation7]  }
  0x10   :  { %26 = vadd.xlane.f32.xlu0 %v25_v2  ;;  %v30_v5 = vadd.f32 %v29_v4, %v28_v3  ;;  %v142_v26 = vstv %s141_s24  ;;  %s186_s25 = sshll.u32 %s246_s0, 4  ;;  %s187_s25 = int_to_ptr.vmem [resolvable:$true] %s186_s25 }
  0x11   :  { %v52_v9 = vadd.s32 128, %v51_v8  ;;  %v53_v10 = vmul.u32 256, %v46_v7  ;;  %s221_s26 = scalar_lea.vmem %s187_s25, 256  ;;  %p226_p6 = scmp.lt.s32.totalorder %s187_s25, %s187_s25 }
  0x12   :  { %p222_p5 = scmp.ne.s32.totalorder %s187_s25, %s221_s26  ;;  %p227_p7 = scmp.lt.s32.totalorder %s221_s26, %s221_s26 }
  0x13   :  { %v54_v11 = vadd.s32 %v53_v10, %v51_v8  ;;  %v55_v12 = vadd.s32 %v53_v10, %v52_v9 }
  0x14   :  { %31 = vadd.xlane.f32.xlu0 %v30_v5  ;;  %p228_p8 = por %p227_p7, %p226_p6 }
  0x15   :  { %v59_v15 = vxor.u32 %v58_v13, %v54_v11  ;;  %v60_v16 = vxor.u32 %v58_v13, %v55_v12  ;;  %v87_v17 = vxor.u32 %v86_v14, %v54_v11  ;;  %v88_v18 = vxor.u32 %v86_v14, %v55_v12 }
  0x16   :  { %v115_v24 = vxor.u32 %v114_v19, %v54_v11  ;;  %v116_v25 = vxor.u32 %v114_v19, %v55_v12  ;;  %v143_v33 = vxor.u32 %v142_v26, %v54_v11  ;;  %v144_v34 = vxor.u32 %v142_v26, %v55_v12  ;;  %p229_p9 = pnand %p228_p8, %p222_p5 }
  0x17   :  { %v61_v20 = vshrl.u32 %v59_v15, 16  ;;  %v62_v21 = vshrl.u32 %v60_v16, 16  ;;  %v89_v22 = vshrl.u32 %v87_v17, 16  ;;  %v90_v23 = vshrl.u32 %v88_v18, 16 }
  0x18   :  { %v117_v31 = vshrl.u32 %v115_v24, 16  ;;  %v118_v32 = vshrl.u32 %v116_v25, 16  ;;  %v145_v41 = vshrl.u32 %v143_v33, 16  ;;  %v146_v42 = vshrl.u32 %v144_v34, 16 }
  0x19   :  { %v63_v27 = vxor.u32 %v61_v20, %v59_v15  ;;  %v64_v28 = vxor.u32 %v62_v21, %v60_v16  ;;  %v91_v29 = vxor.u32 %v89_v22, %v87_v17  ;;  %v92_v30 = vxor.u32 %v90_v23, %v88_v18 }
  0x1a   :  { %v119_v39 = vxor.u32 %v117_v31, %v115_v24  ;;  %v120_v40 = vxor.u32 %v118_v32, %v116_v25  ;;  %v147_v49 = vxor.u32 %v145_v41, %v143_v33  ;;  %v148_v50 = vxor.u32 %v146_v42, %v144_v34 }
  0x1b   :  { %v65_v35 = vmul.u32 2146121005, %v63_v27  ;;  %v66_v36 = vmul.u32 2146121005, %v64_v28 }
  0x1c   :  { %v93_v37 = vmul.u32 2146121005, %v91_v29  ;;  %v94_v38 = vmul.u32 2146121005, %v92_v30 }
  0x1d   :  { %v67_v43 = vshrl.u32 %v65_v35, 15  ;;  %v68_v44 = vshrl.u32 %v66_v36, 15  ;;  %v121_v47 = vmul.u32 2146121005, %v119_v39  ;;  %v122_v48 = vmul.u32 2146121005, %v120_v40 }
  0x1e   :  { %v95_v45 = vshrl.u32 %v93_v37, 15  ;;  %v96_v46 = vshrl.u32 %v94_v38, 15  ;;  %v149_v57 = vmul.u32 2146121005, %v147_v49  ;;  %v150_v58 = vmul.u32 2146121005, %v148_v50 }
  0x1f   :  { %v69_v51 = vxor.u32 %v67_v43, %v65_v35  ;;  %v70_v52 = vxor.u32 %v68_v44, %v66_v36  ;;  %v123_v55 = vshrl.u32 %v121_v47, 15  ;;  %v124_v56 = vshrl.u32 %v122_v48, 15 }
  0x20   :  { %v97_v53 = vxor.u32 %v95_v45, %v93_v37  ;;  %v98_v54 = vxor.u32 %v96_v46, %v94_v38  ;;  %v151_v3 = vshrl.u32 %v149_v57, 15  ;;  %v152_v4 = vshrl.u32 %v150_v58, 15 }
  0x21   :  { %v71_v59 = vmul.u32 2221713035, %v69_v51  ;;  %v72_v60 = vmul.u32 2221713035, %v70_v52  ;;  %v125_v63 = vxor.u32 %v123_v55, %v121_v47  ;;  %v126_v2 = vxor.u32 %v124_v56, %v122_v48 }
  0x22   :  { %v99_v61 = vmul.u32 2221713035, %v97_v53  ;;  %v100_v62 = vmul.u32 2221713035, %v98_v54  ;;  %v153_v11 = vxor.u32 %v151_v3, %v149_v57  ;;  %v154_v12 = vxor.u32 %v152_v4, %v150_v58 }
  0x23   :  { %v73_v5 = vshrl.u32 %v71_v59, 16  ;;  %v74_v6 = vshrl.u32 %v72_v60, 16  ;;  %v127_v9 = vmul.u32 2221713035, %v125_v63  ;;  %v128_v10 = vmul.u32 2221713035, %v126_v2 }
  0x24   :  { %v101_v7 = vshrl.u32 %v99_v61, 16  ;;  %v102_v8 = vshrl.u32 %v100_v62, 16  ;;  %v155_v19 = vmul.u32 2221713035, %v153_v11  ;;  %v156_v20 = vmul.u32 2221713035, %v154_v12 }
  0x25   :  { %v75_v13 = vxor.u32 %v73_v5, %v71_v59  ;;  %v76_v14 = vxor.u32 %v74_v6, %v72_v60  ;;  %v129_v17 = vshrl.u32 %v127_v9, 16  ;;  %v130_v18 = vshrl.u32 %v128_v10, 16 }
  0x26   :  { %v103_v15 = vxor.u32 %v101_v7, %v99_v61  ;;  %v104_v16 = vxor.u32 %v102_v8, %v100_v62  ;;  %v157_v27 = vshrl.u32 %v155_v19, 16  ;;  %v158_v28 = vshrl.u32 %v156_v20, 16 }
  0x27   :  { %v77_v21 = vshrl.u32 %v75_v13, 8  ;;  %v78_v22 = vshrl.u32 %v76_v14, 8  ;;  %v131_v25 = vxor.u32 %v129_v17, %v127_v9  ;;  %v132_v26 = vxor.u32 %v130_v18, %v128_v10 }
  0x28   :  { %v105_v23 = vshrl.u32 %v103_v15, 8  ;;  %v106_v24 = vshrl.u32 %v104_v16, 8  ;;  %v159_v37 = vxor.u32 %v157_v27, %v155_v19  ;;  %v160_v38 = vxor.u32 %v158_v28, %v156_v20 }
  0x29   :  { %v79_v31 = vcvt.s32.f32 %v77_v21  ;;  %v80_v32 = vcvt.s32.f32 %v78_v22  ;;  %v133_v35 = vshrl.u32 %v131_v25, 8  ;;  %v134_v36 = vshrl.u32 %v132_v26, 8 }
  0x2a   :  { %v107_v33 = vcvt.s32.f32 %v105_v23  ;;  %v108_v34 = vcvt.s32.f32 %v106_v24  ;;  %v161_v49 = vshrl.u32 %v159_v37, 8  ;;  %v162_v50 = vshrl.u32 %v160_v38, 8 }
  0x2b   :  { %v81_v42 = vmul.f32 5.9604645e-08, %v79_v31  ;;  %v82_v43 = vmul.f32 5.9604645e-08, %v80_v32  ;;  %v135_v46 = vcvt.s32.f32 %v133_v35  ;;  %v136_v48 = vcvt.s32.f32 %v134_v36 }
  0x2c   :  { %v109_v44 = vmul.f32 5.9604645e-08, %v107_v33  ;;  %v110_v45 = vmul.f32 5.9604645e-08, %v108_v34  ;;  %v163_v56 = vcvt.s32.f32 %v161_v49  ;;  %v164_v57 = vcvt.s32.f32 %v162_v50 }
  0x2d   :  { %v137_v54 = vmul.f32 5.9604645e-08, %v135_v46  ;;  %v138_v55 = vmul.f32 5.9604645e-08, %v136_v48 }
  0x2e   :  { %v111_v52 = vadd.f32 %v109_v44, %v81_v42  ;;  %v112_v53 = vadd.f32 %v110_v45, %v82_v43  ;;  %v165_v60 = vmul.f32 5.9604645e-08, %v163_v56  ;;  %v166_v61 = vmul.f32 5.9604645e-08, %v164_v57 }
  0x30   :  { %v139_v58 = vadd.f32 %v137_v54, %v111_v52  ;;  %v140_v59 = vadd.f32 %v138_v55, %v112_v53 }
  0x32   :  { %v167_v62 = vadd.f32 %v165_v60, %v139_v58  ;;  %v168_v63 = vadd.f32 %v166_v61, %v140_v59 }
  0x34   :  { %v195_v2 = vadd.f32 -2.0, %v167_v62  ;;  %v196_v3 = vadd.f32 -2.0, %v168_v63 }
  0x36   :  { %v171_v8 = vmul.f32 1.7320508, %v195_v2  ;;  %v172_v9 = vmul.f32 1.7320508, %v196_v3 }
  0x99   :  { %v27_v29 = vpop.xlane.xlu0 %26 }
  0x9a   :  { %v33_v30 = vmul.f32 0.00390625, %v27_v29 }
  0x9c   :  { %v35_v40 = vmul.f32 %v33_v30, %v33_v30 }
  0x9d   :  { %v32_v39 = vpop.xlane.xlu0 %31 }
  0x9e   :  { %v34_v41 = vmul.f32 0.00390625, %v32_v39 }
  0xa0   :  { %v36_v47 = vsub.f32 %v34_v41, %v35_v40 }
  0xa2   :  { %v37_v51 = vmax.f32 %v36_v47, 0.0 }
  0xa4   :  { %199 = vrsqrt.f32 %v37_v51  ;;  %vm40_vm0 = vcmp.eq.f32.partialorder %v37_v51, inf  ;;  %v43_v6 = vand.u32 2147483648, %v37_v51  ;;  %vm42_vm1 = vcmp.eq.f32.partialorder %v37_v51, 0.0 }
  0xb1   :  { %v200_v4 = vpop.eup %199 }
  0xb2   :  { %v39_v5 = vmul.f32 %v200_v4, %v37_v51 }
  0xb4   :  { %v41_v7 = vsel %vm40_vm0, %v37_v51, %v39_v5 }
  0xb5   :  { %v44_v10 = vsel %vm42_vm1, %v43_v6, %v41_v7 }
  0xb6   :  { %v173_v11 = vmul.f32 0.5, %v44_v10 }
  0xb8   :  { %v174_v12 = vmul.f32 %v173_v11, %v171_v8  ;;  %v175_v13 = vmul.f32 %v173_v11, %v172_v9 }
  0xba   :  { %v176_v14 = vadd.f32 %v174_v12, %v265_v0  ;;  %v177_v15 = vadd.f32 %v175_v13, %v267_v1 }
  0xbc   :  { %178 = vst [vmem:[#allocation7] sm:$0xff] %v176_v14  ;;  %179 = vst [vmem:[#allocation7 + $0x8] sm:$0xff] %v177_v15 }
  0xbd   :  { %232 = shalt.err (!%p229_p9)
}
  0xbe   :  { %189 = dma.vmem_to_hbm [thread:$0]  %s187_s25, 256, %s294_s2, [#allocation6]  }
  0xbf   :  { %243 = dma.done.wait [#allocation6], 256  }
  0xc0   :  { %244 = vsyncadd [#allocation6], 4294967040 }
  0xc1   :  { %193 = vsyncpa [#allocation5], 1 }
  0xc2   :  { %194 = vsyncpa [#allocation6], 1 }

</bundles_post_ra>
